<compile_context>
chip_gen: v5e
topology: v5e:2x2
jax: 0.10.0
libtpu: 0.0.40
codegen_flags: <defaults>
</compile_context>

<pallas_src>
import jax
import jax.numpy as jnp
from jax.experimental import pallas as pl
from jax.experimental.pallas import tpu as pltpu

# ---- operator geometry (small, synthetic CT-like operator) -----------------
H, W = 16, 16                  # operator.domain.shape
N_ANGLES, N_DET = 8, 16        # operator.range.shape
D_IN = H * W                   # 256
D_OUT = N_ANGLES * N_DET       # 128
DOMAIN_SHAPE = (H, W)
RANGE_SHAPE = (N_ANGLES, N_DET)


# ---- Pallas kernel: one full-K MXU matmul per batch tile --------------------
def _op_matmul_kernel(x_ref, at_ref, o_ref):
    # x_ref:  (bm, D_IN)   tile of flattened images
    # at_ref: (D_IN, D_OUT) full A^T (resident, same block every grid step)
    # o_ref:  (bm, D_OUT)  output sinogram tile (flattened)
    o_ref[...] = jnp.dot(
        x_ref[...], at_ref[...], preferred_element_type=jnp.float32
    ).astype(o_ref.dtype)


def _round_up(x, m):
    return ((x + m - 1) // m) * m


def _apply_linear_operator(x_flat, a_t, *, bm_target=512,
                           compute_dtype=jnp.float32):
    """x_flat: (B, D_IN), a_t: (D_IN, D_OUT) -> (B, D_OUT) f32."""
    B, K = x_flat.shape
    K2, N = a_t.shape
    assert K == K2, (K, K2)

    # Optional bf16 operands for v6e/v7x MXU throughput; accumulate in f32.
    x_flat = x_flat.astype(compute_dtype)
    a_t = a_t.astype(compute_dtype)

    # Batch tile: multiple of 8 (sublanes), bounded so VMEM stays small even
    # for huge B (x tile + out tile double-buffered).  Pad B so the grid
    # divides evenly -> no masked partial stores, full vreg rows.
    bm = min(bm_target, _round_up(B, 8))
    b_pad = _round_up(B, bm)
    if b_pad != B:
        x_flat = jnp.pad(x_flat, ((0, b_pad - B), (0, 0)))

    itemsize = jnp.dtype(compute_dtype).itemsize
    cost = pl.CostEstimate(
        flops=2 * b_pad * K * N,
        transcendentals=0,
        bytes_accessed=b_pad * K * itemsize + K * N * itemsize + b_pad * N * 4,
    )

    y = pl.pallas_call(
        _op_matmul_kernel,
        out_shape=jax.ShapeDtypeStruct((b_pad, N), jnp.float32),
        grid_spec=pltpu.PrefetchScalarGridSpec(
            num_scalar_prefetch=0,
            grid=(b_pad // bm,),
            in_specs=[
                pl.BlockSpec((bm, K), lambda i: (i, 0)),   # batch-tiled X
                pl.BlockSpec((K, N), lambda i: (0, 0)),    # full A^T, resident
            ],
            out_specs=pl.BlockSpec((bm, N), lambda i: (i, 0)),
        ),
        compiler_params=pltpu.CompilerParams(
            dimension_semantics=("parallel",),   # batch axis -> megacore shard
        ),
        cost_estimate=cost,
    )(x_flat, a_t)

    return y[:B] if b_pad != B else y


# ---- OperatorModule equivalent ----------------------------------------------
class OperatorModulePallas:
    """JAX/Pallas analogue of the torch OperatorModule wrapping a linear op."""

    def __init__(self, op_matrix, domain_shape, range_shape,
                 compute_dtype=jnp.float32):
        # op_matrix: (prod(range_shape), prod(domain_shape))
        self.domain_shape = tuple(domain_shape)
        self.range_shape = tuple(range_shape)
        self.compute_dtype = compute_dtype
        self.a_t = jnp.asarray(op_matrix, jnp.float32).T  # (D_IN, D_OUT)

    def __call__(self, x):
        in_shape = tuple(x.shape)
        op_in_ndim = len(self.domain_shape)
        if len(in_shape) <= op_in_ndim or in_shape[-op_in_ndim:] != self.domain_shape:
            raise ValueError(
                "input tensor has wrong shape: expected (N, *, {}), got {}".format(
                    self.domain_shape, in_shape
                )
            )
        extra_shape = in_shape[:-op_in_ndim]              # e.g. (N, C)
        x_flat = x.reshape((-1,) + self.domain_shape)     # (B, H, W)
        x_flat = x_flat.reshape((x_flat.shape[0], -1)).astype(jnp.float32)
        y_flat = _apply_linear_operator(
            x_flat, self.a_t, compute_dtype=self.compute_dtype
        )                                                 # (B, D_OUT)
        return y_flat.reshape(extra_shape + self.range_shape)


def _make_operator_matrix():
    """Deterministic synthetic linear operator matrix (D_OUT, D_IN)."""
    # TODO(synk): a real ODL RayTransform would be built from scan geometry;
    # here we use a deterministic dense matrix as the stand-in linear operator.
    key = jax.random.PRNGKey(42)
    a = jax.random.normal(key, (D_OUT, D_IN), dtype=jnp.float32)
    return a / jnp.sqrt(jnp.float32(D_IN))


if __name__ == "__main__":
    # (N, C, H, W) with operator domain (H, W) -> extra dims (N, C) = (2, 4).
    x = jax.random.normal(jax.random.PRNGKey(0), (2, 4, H, W), dtype=jnp.float32)

    a = _make_operator_matrix()
    module = OperatorModulePallas(a, DOMAIN_SHAPE, RANGE_SHAPE)

    y = module(x)
    y = jax.block_until_ready(y)

    assert y.shape == (2, 4, N_ANGLES, N_DET), y.shape
    assert y.dtype == jnp.float32

    # Pure-JAX reference check of the Pallas matmul.
    y_ref = jnp.einsum("bk,ok->bo", x.reshape(-1, D_IN), a).reshape(
        2, 4, N_ANGLES, N_DET
    )
    assert jnp.allclose(y, y_ref, atol=1e-4, rtol=1e-4)

    print("KERNEL_OK")
</pallas_src>

<mosaic_0001>
module attributes {stable_mosaic.version = 11 : i64} {
  func.func @_op_matmul_kernel(%arg0: i32, %arg1: memref<8x256xf32, #tpu.memory_space<vmem>>, %arg2: memref<256x128xf32, #tpu.memory_space<vmem>>, %arg3: memref<8x128xf32, #tpu.memory_space<vmem>>) attributes {dimension_semantics = [#tpu.dimension_semantics<parallel>], iteration_bounds = array<i64: 1>, scalar_prefetch = 0 : i64, scratch_operands = 0 : i64, tpu.core_type = #tpu.core_type<tc>, window_params = [{transform_indices = @transform_0, window_bounds = array<i64: 8, 256>}, {pipeline_mode = #tpu.pipeline_mode<synchronous>, transform_indices = @transform_1, window_bounds = array<i64: 256, 128>}, {transform_indices = @transform_2, window_bounds = array<i64: 8, 128>}]} {
    %c0 = arith.constant 0 : index
    %c0_0 = arith.constant 0 : index
    %0 = vector.load %arg1[%c0, %c0_0] : memref<8x256xf32, #tpu.memory_space<vmem>>, vector<8x256xf32>
    %c0_1 = arith.constant 0 : index
    %c0_2 = arith.constant 0 : index
    %1 = vector.load %arg2[%c0_1, %c0_2] : memref<256x128xf32, #tpu.memory_space<vmem>>, vector<256x128xf32>
    %cst = arith.constant dense<0.000000e+00> : vector<8x128xf32>
    %2 = tpu.matmul %0, %1, %cst {dimension_numbers = #tpu.dot_dimension_numbers<[1], [0], [0], [1], [0, 0, 1, 1], [], []>} : vector<8x256xf32>, vector<256x128xf32>, vector<8x128xf32> -> vector<8x128xf32>
    %c0_3 = arith.constant 0 : index
    %c0_4 = arith.constant 0 : index
    %3 = vector.load %arg3[%c0_3, %c0_4] : memref<8x128xf32, #tpu.memory_space<vmem>>, vector<8x128xf32>
    tpu.vector_store %arg3[%c0_3, %c0_4], %2 {strides = array<i32>} : memref<8x128xf32, #tpu.memory_space<vmem>>, vector<8x128xf32>,
    return
  }
  func.func @transform_0(%arg0: i32) -> (i32, i32) {
    %c0_i32 = arith.constant 0 : i32
    %c0_i32_0 = arith.constant 0 : i32
    return %arg0, %c0_i32 : i32, i32
  }
  func.func @transform_1(%arg0: i32) -> (i32, i32) {
    %c0_i32 = arith.constant 0 : i32
    %c0_i32_0 = arith.constant 0 : i32
    %c0_i32_1 = arith.constant 0 : i32
    return %c0_i32, %c0_i32_0 : i32, i32
  }
  func.func @transform_2(%arg0: i32) -> (i32, i32) {
    %c0_i32 = arith.constant 0 : i32
    %c0_i32_0 = arith.constant 0 : i32
    return %arg0, %c0_i32 : i32, i32
  }
}

</mosaic_0001>

<bundles_post_ra>
// kernel: tpu_custom_call.1
= control target key start
LH: loop header
LB: loop body
LE: loop exit
PB: predicated region body
PF: predicated region fallthrough
CT: control target
= control target key end

     0   :  { %7 = vsyncpa [#allocation3], 0  ;;  %s247_s0 = inlined_call_operand.hbm [shape: f32[8,256], index: 0, kind: input, shape index: {}]   ;;  %s248_s1 = inlined_call_operand.hbm [shape: f32[256,128], index: 1, kind: input, shape index: {}]   ;;  %s249_s2 = inlined_call_operand.hbm [shape: f32[8,128], index: 2, kind: output, shape index: {}]  }
   0x1   :  { %8 = vsyncpa [#allocation6], 0 }
   0x2   :  { %9 = vsyncpa [#allocation4], 0  ;;  %s15_s11 = sshll.u32 %s247_s0, 4  ;;  %s218_s12 = smov [#allocation2]   ;;  %s16_s11 = int_to_ptr.hbm [resolvable:$true] %s15_s11 }
   0x3   :  { %s17_s13 = sshll.u32 %s218_s12, 4  ;;  %s25_s16 = sshll.u32 %s248_s1, 4  ;;  %s18_s13 = int_to_ptr.vmem [resolvable:$true] %s17_s13  ;;  %s26_s16 = int_to_ptr.hbm [resolvable:$true] %s25_s16 }
   0x4   :  { %20 = dma.hbm_to_vmem [thread:$0]  %s16_s11, 256, %s18_s13, [#allocation3]  }
   0x5   :  { %s219_s17 = smov [#allocation5]   ;;  %s220_s19 = smov 128  }
   0x6   :  { %s27_s18 = sshll.u32 %s219_s17, 4  ;;  %s221_s20 = smov 8   ;;  %s28_s18 = int_to_ptr.vmem [resolvable:$true] %s27_s18 }
   0x7   :  { %33 = dma.hbm_to_vmem [thread:$0]  %s26_s16, 4096, %s28_s18, [#allocation6], %s220_s19, %s220_s19, %s221_s20  }
   0x8   :  { %212 = dma.done.wait [#allocation3], 256  }
   0x9   :  { %213 = vsyncadd [#allocation3], 4294967040 }
   0xa   :  { %214 = dma.done.wait [#allocation6], 4096  }
   0xb   :  { %215 = vsyncadd [#allocation6], 4294963200  ;;  %v59_v0 = vld [vmem:[#allocation5 + $0x78] sm:$0xff]  ;;  %v58_v2 = vld [vmem:[#allocation5 + $0x70] sm:$0xff]  ;;  %s222_s0 = smov [#allocation7]   ;;  %s124_s23 = sshll.u32 %s249_s2, 4  ;;  %s125_s23 = int_to_ptr.hbm [resolvable:$true] %s124_s23 }
   0xc   :  { %v75_v1 = vld [vmem:[#allocation5 + $0xf8] sm:$0xff]  ;;  %76 = vmatpush.msra.mxu0 %v59_v0  ;;  %v74_v3 = vld [vmem:[#allocation5 + $0xf0] sm:$0xff]  ;;  %v57_v4 = vld [vmem:[#allocation5 + $0x68] sm:$0xff]  ;;  %s122_s1 = sshll.u32 %s222_s0, 4  ;;  %s123_s1 = int_to_ptr.vmem [resolvable:$true] %s122_s1 }
   0xd   :  { %96 = vmatpush.msra.mxu1 %v75_v1  ;;  %v73_v5 = vld [vmem:[#allocation5 + $0xe8] sm:$0xff]  ;;  %v56_v6 = vld [vmem:[#allocation5 + $0x60] sm:$0xff]  ;;  %v55_v8 = vld [vmem:[#allocation5 + $0x58] sm:$0xff] }
   0xe   :  { %77 = vmatpush.msra.mxu0 %v58_v2  ;;  %v72_v7 = vld [vmem:[#allocation5 + $0xe0] sm:$0xff]  ;;  %v71_v9 = vld [vmem:[#allocation5 + $0xd8] sm:$0xff]  ;;  %v54_v10 = vld [vmem:[#allocation5 + $0x50] sm:$0xff] }
   0xf   :  { %97 = vmatpush.msra.mxu1 %v74_v3  ;;  %v70_v11 = vld [vmem:[#allocation5 + $0xd0] sm:$0xff]  ;;  %v53_v12 = vld [vmem:[#allocation5 + $0x48] sm:$0xff]  ;;  %v52_v14 = vld [vmem:[#allocation5 + $0x40] sm:$0xff] }
  0x10   :  { %78 = vmatpush.msra.mxu0 %v57_v4  ;;  %v69_v13 = vld [vmem:[#allocation5 + $0xc8] sm:$0xff]  ;;  %v68_v15 = vld [vmem:[#allocation5 + $0xc0] sm:$0xff]  ;;  %v51_v16 = vld [vmem:[#allocation5 + $0x38] sm:$0xff] }
  0x11   :  { %98 = vmatpush.msra.mxu1 %v73_v5  ;;  %v67_v17 = vld [vmem:[#allocation5 + $0xb8] sm:$0xff]  ;;  %v50_v18 = vld [vmem:[#allocation5 + $0x30] sm:$0xff]  ;;  %v49_v20 = vld [vmem:[#allocation5 + $0x28] sm:$0xff] }
  0x12   :  { %79 = vmatpush.msra.mxu0 %v56_v6  ;;  %v66_v19 = vld [vmem:[#allocation5 + $0xb0] sm:$0xff]  ;;  %v65_v21 = vld [vmem:[#allocation5 + $0xa8] sm:$0xff]  ;;  %v48_v22 = vld [vmem:[#allocation5 + $0x20] sm:$0xff] }
  0x13   :  { %99 = vmatpush.msra.mxu1 %v72_v7  ;;  %v64_v23 = vld [vmem:[#allocation5 + $0xa0] sm:$0xff]  ;;  %v47_v24 = vld [vmem:[#allocation5 + $0x18] sm:$0xff]  ;;  %v46_v26 = vld [vmem:[#allocation5 + $0x10] sm:$0xff] }
  0x14   :  { %80 = vmatpush.msra.mxu0 %v55_v8  ;;  %v63_v25 = vld [vmem:[#allocation5 + $0x98] sm:$0xff]  ;;  %v62_v27 = vld [vmem:[#allocation5 + $0x90] sm:$0xff]  ;;  %v45_v28 = vld [vmem:[#allocation5 + $0x8] sm:$0xff] }
  0x15   :  { %100 = vmatpush.msra.mxu1 %v71_v9  ;;  %v61_v29 = vld [vmem:[#allocation5 + $0x88] sm:$0xff]  ;;  %v44_v30 = vld [vmem:[#allocation5] sm:$0xff]  ;;  %v42_v32 = vld [vmem:[#allocation2] sm:$0xff] }
  0x16   :  { %81 = vmatpush.msra.mxu0 %v54_v10  ;;  %v60_v31 = vld [vmem:[#allocation5 + $0x80] sm:$0xff]  ;;  %v43_v33 = vld [vmem:[#allocation2 + $0x8] sm:$0xff] }
  0x17   :  { %101 = vmatpush.msra.mxu1 %v70_v11 }
  0x18   :  { %82 = vmatpush.msra.mxu0 %v53_v12 }
  0x19   :  { %102 = vmatpush.msra.mxu1 %v69_v13 }
  0x1a   :  { %83 = vmatpush.msra.mxu0 %v52_v14 }
  0x1b   :  { %103 = vmatpush.msra.mxu1 %v68_v15 }
  0x1c   :  { %84 = vmatpush.msra.mxu0 %v51_v16 }
  0x1d   :  { %104 = vmatpush.msra.mxu1 %v67_v17 }
  0x1e   :  { %85 = vmatpush.msra.mxu0 %v50_v18 }
  0x1f   :  { %105 = vmatpush.msra.mxu1 %v66_v19 }
  0x20   :  { %86 = vmatpush.msra.mxu0 %v49_v20 }
  0x21   :  { %106 = vmatpush.msra.mxu1 %v65_v21 }
  0x22   :  { %87 = vmatpush.msra.mxu0 %v48_v22 }
  0x23   :  { %107 = vmatpush.msra.mxu1 %v64_v23 }
  0x24   :  { %88 = vmatpush.msra.mxu0 %v47_v24 }
  0x25   :  { %108 = vmatpush.msra.mxu1 %v63_v25 }
  0x26   :  { %89 = vmatpush.msra.mxu0 %v46_v26 }
  0x27   :  { %109 = vmatpush.msra.mxu1 %v62_v27 }
  0x28   :  { %90 = vmatpush.msra.mxu0 %v45_v28 }
  0x29   :  { %110 = vmatpush.msra.mxu1 %v61_v29 }
  0x2a   :  { %91 = vmatpush.msra.mxu0 %v44_v30 }
  0x2b   :  { %111 = vmatpush.msra.mxu1 %v60_v31  ;;  %92 = vmatmul.f32.vlgmr.msra.gmra.mxu0 %v42_v32 }
  0x2c   :  { %112 = vmatmul.f32.vlgmr.msra.gmra.mxu1 %v43_v33 }
  0xa8   :  { %v93_v34 = vpop.f32.mrf.mxu0 }
  0xa9   :  { %v113_v35 = vpop.f32.mrf.mxu1 }
  0xaa   :  { %v114_v36 = vadd.f32 %v113_v35, %v93_v34 }
  0xac   :  { %116 = vst [vmem:[#allocation7] sm:$0xff] %v114_v36 }
  0xad   :  { %127 = dma.vmem_to_hbm [thread:$0]  %s123_s1, 128, %s125_s23, [#allocation4]  }
  0xae   :  { %216 = dma.done.wait [#allocation4], 128  }
  0xaf   :  { %217 = vsyncadd [#allocation4], 4294967168 }
  0xb0   :  { %132 = vsyncpa [#allocation3], 1 }
  0xb1   :  { %133 = vsyncpa [#allocation6], 1 }
  0xb2   :  { %134 = vsyncpa [#allocation4], 1 }

</bundles_post_ra>
